<compile_context>
chip_gen: v7x
topology: tpu7x:2x2x1
jax: 0.10.0
libtpu: 0.0.40
codegen_flags: <defaults>
</compile_context>

<pallas_src>
import jax
import jax.numpy as jnp
from jax.experimental import pallas as pl
from jax.experimental.pallas import tpu as pltpu

KERNEL = 3   # MaxPool2d kernel_size
STRIDE = 1   # MaxPool2d stride


def _maxpool_kernel(x_ref, o_ref):
    # x_ref: (H, W, LB)  lane-dense tile (lanes = fused N*C chunk)
    # o_ref: (Ho, Wo, LB)
    Ho = o_ref.shape[0]
    Wo = o_ref.shape[1]
    x = x_ref[...]
    # Separable 3x3 max (stride 1, no padding):
    #   1) max over the 3 column shifts (W = sublane axis -> cheap addressing)
    col = jnp.maximum(jnp.maximum(x[:, 0:Wo, :], x[:, 1:Wo + 1, :]),
                      x[:, 2:Wo + 2, :])
    #   2) max over the 3 row shifts (H = outer axis -> free addressing)
    o_ref[...] = jnp.maximum(jnp.maximum(col[0:Ho, :, :], col[1:Ho + 1, :, :]),
                             col[2:Ho + 2, :, :])


def maxpool2d_3x3_s1(x):
    """x: (N, C, H, W) float array -> (N, C, H-2, W-2). Matches MaxPool2d(3, 1)."""
    N, C, H, W = x.shape
    Ho = (H - KERNEL) // STRIDE + 1
    Wo = (W - KERNEL) // STRIDE + 1
    NC = N * C

    # Lane-dense slab: (H, W, N*C) -- fused batch*channel on the 128-lane axis.
    xt = jnp.transpose(x.reshape(NC, H, W), (1, 2, 0))

    # Lane-chunk selection: 128-lane chunks when N*C allows (unmasked stores and
    # multiple parallel grid blocks for v7x's 2 TCs); otherwise the whole fused
    # axis in a single block (tiny demo case).
    # TODO(synk): for very large H*W, additionally cap the spatial extent per
    # block (with a 2-row halo) so double-buffered tiles stay within v7x's VMEM.
    if NC % 128 == 0:
        lane_block = 128
    else:
        lane_block = NC
    grid = (NC // lane_block,)

    yt = pl.pallas_call(
        _maxpool_kernel,
        out_shape=jax.ShapeDtypeStruct((Ho, Wo, NC), x.dtype),
        grid_spec=pltpu.PrefetchScalarGridSpec(
            num_scalar_prefetch=0,
            grid=grid,
            in_specs=[
                pl.BlockSpec((H, W, lane_block), lambda i: (0, 0, i)),
            ],
            out_specs=pl.BlockSpec((Ho, Wo, lane_block), lambda i: (0, 0, i)),
        ),
        compiler_params=pltpu.CompilerParams(
            dimension_semantics=("parallel",),
        ),
    )(xt)

    # Back to PyTorch's NCHW layout.
    return jnp.transpose(yt, (2, 0, 1)).reshape(N, C, Ho, Wo)


def _reference_maxpool(x):
    # pure-JAX reference (same semantics as torch MaxPool2d(3, 1, padding=0))
    N, C, H, W = x.shape
    Ho, Wo = H - 2, W - 2
    acc = x[:, :, 0:Ho, 0:Wo]
    for di in range(3):
        for dj in range(3):
            acc = jnp.maximum(acc, x[:, :, di:di + Ho, dj:dj + Wo])
    return acc


if __name__ == "__main__":
    key = jax.random.PRNGKey(0)
    # Net has no learned parameters (only MaxPool2d), so just build an input.
    x = jax.random.normal(key, (2, 4, 16, 16), dtype=jnp.float32)

    y = maxpool2d_3x3_s1(x)
    jax.block_until_ready(y)

    y_ref = _reference_maxpool(x)
    assert y.shape == (2, 4, 14, 14), y.shape
    assert jnp.allclose(y, y_ref), "mismatch vs reference"

    print("KERNEL_OK")
</pallas_src>

<mosaic_0001>
module attributes {stable_mosaic.version = 11 : i64} {
  func.func @_maxpool_kernel(%arg0: i32, %arg1: memref<16x16x8xf32, #tpu.memory_space<vmem>>, %arg2: memref<14x14x8xf32, #tpu.memory_space<vmem>>) attributes {dimension_semantics = [#tpu.dimension_semantics<parallel>], iteration_bounds = array<i64: 1>, scalar_prefetch = 0 : i64, scratch_operands = 0 : i64, tpu.core_type = #tpu.core_type<tc>, window_params = [{transform_indices = @transform_0, window_bounds = array<i64: 16, 16, 8>}, {transform_indices = @transform_1, window_bounds = array<i64: 14, 14, 8>}]} {
    %c0 = arith.constant 0 : index
    %c0_0 = arith.constant 0 : index
    %c0_1 = arith.constant 0 : index
    %0 = vector.load %arg1[%c0, %c0_0, %c0_1] : memref<16x16x8xf32, #tpu.memory_space<vmem>>, vector<16x16x8xf32>
    %1 = vector.extract_strided_slice %0 {offsets = [0, 0, 0], sizes = [16, 14, 8], strides = [1, 1, 1]} : vector<16x16x8xf32> to vector<16x14x8xf32>
    %2 = vector.extract_strided_slice %0 {offsets = [0, 1, 0], sizes = [16, 14, 8], strides = [1, 1, 1]} : vector<16x16x8xf32> to vector<16x14x8xf32>
    %3 = arith.maximumf %1, %2 : vector<16x14x8xf32>
    %4 = vector.extract_strided_slice %0 {offsets = [0, 2, 0], sizes = [16, 14, 8], strides = [1, 1, 1]} : vector<16x16x8xf32> to vector<16x14x8xf32>
    %5 = arith.maximumf %3, %4 : vector<16x14x8xf32>
    %6 = vector.extract_strided_slice %5 {offsets = [0, 0, 0], sizes = [14, 14, 8], strides = [1, 1, 1]} : vector<16x14x8xf32> to vector<14x14x8xf32>
    %7 = vector.extract_strided_slice %5 {offsets = [1, 0, 0], sizes = [14, 14, 8], strides = [1, 1, 1]} : vector<16x14x8xf32> to vector<14x14x8xf32>
    %8 = arith.maximumf %6, %7 : vector<14x14x8xf32>
    %9 = vector.extract_strided_slice %5 {offsets = [2, 0, 0], sizes = [14, 14, 8], strides = [1, 1, 1]} : vector<16x14x8xf32> to vector<14x14x8xf32>
    %10 = arith.maximumf %8, %9 : vector<14x14x8xf32>
    %c0_2 = arith.constant 0 : index
    %c0_3 = arith.constant 0 : index
    %c0_4 = arith.constant 0 : index
    %11 = vector.load %arg2[%c0_2, %c0_3, %c0_4] : memref<14x14x8xf32, #tpu.memory_space<vmem>>, vector<14x14x8xf32>
    tpu.vector_store %arg2[%c0_2, %c0_3, %c0_4], %10 {strides = array<i32>} : memref<14x14x8xf32, #tpu.memory_space<vmem>>, vector<14x14x8xf32>,
    return
  }
  func.func @transform_0(%arg0: i32) -> (i32, i32, i32) {
    %c0_i32 = arith.constant 0 : i32
    %c0_i32_0 = arith.constant 0 : i32
    %c0_i32_1 = arith.constant 0 : i32
    return %c0_i32, %c0_i32_0, %arg0 : i32, i32, i32
  }
  func.func @transform_1(%arg0: i32) -> (i32, i32, i32) {
    %c0_i32 = arith.constant 0 : i32
    %c0_i32_0 = arith.constant 0 : i32
    %c0_i32_1 = arith.constant 0 : i32
    return %c0_i32, %c0_i32_0, %arg0 : i32, i32, i32
  }
}

</mosaic_0001>

<bundles_post_ra>
// kernel: tpu_custom_call.1
= control target key start
LH: loop header
LB: loop body
LE: loop exit
PB: predicated region body
PF: predicated region fallthrough
CT: control target
= control target key end

     0   :  { %vm72_vm0 = vcmask 1046528   ;;  %vm185_vm1 = vcmask 1045504   ;;  %vm354_vm2 = vcmask 64512   ;;  %vm356_vm3 = vcmask 62464   ;;  %s638_s0 = inlined_call_operand.vmem [shape: f32[16,16,8], index: 0, kind: input, shape index: {}]   ;;  %s639_s1 = inlined_call_operand.vmem [shape: f32[14,14,8], index: 1, kind: output, shape index: {}]  }
   0x1   :  { %v8_v0 = vld [vmem:[%s638_s0] sm:$0xff]  ;;  %v9_v1 = vld [vmem:[%s638_s0 + $0x8] sm:$0xff]  ;;  %v10_v2 = vld [vmem:[%s638_s0 + $0x10] sm:$0xff] }
   0x2   :  { %v11_v3 = vld [vmem:[%s638_s0 + $0x18] sm:$0xff]  ;;  %v12_v4 = vld [vmem:[%s638_s0 + $0x20] sm:$0xff]  ;;  %v13_v5 = vld [vmem:[%s638_s0 + $0x28] sm:$0xff]  ;;  %v73_v6 = vrot.slane %v8_v0, 1  ;;  %v74_v7 = vrot.slane %v9_v1, 1  ;;  %v76_v8 = vrot.slane %v10_v2, 1 }
   0x3   :  { %v77_v9 = vrot.slane %v11_v3, 1  ;;  %v79_v10 = vrot.slane %v12_v4, 1  ;;  %v80_v11 = vrot.slane %v13_v5, 1  ;;  %v186_v12 = vrot.slane %v8_v0, 2  ;;  %v14_v21 = vld [vmem:[%s638_s0 + $0x30] sm:$0xff]  ;;  %v15_v22 = vld [vmem:[%s638_s0 + $0x38] sm:$0xff] }
   0x4   :  { %v75_v13 = vsel %vm72_vm0, %v73_v6, %v74_v7  ;;  %v187_v14 = vrot.slane %v9_v1, 2  ;;  %v189_v15 = vrot.slane %v10_v2, 2  ;;  %v190_v16 = vrot.slane %v11_v3, 2  ;;  %v16_v39 = vld [vmem:[%s638_s0 + $0x40] sm:$0xff]  ;;  %v17_v44 = vld [vmem:[%s638_s0 + $0x48] sm:$0xff]  ;;  %v18_v49 = vld [vmem:[%s638_s0 + $0x50] sm:$0xff] }
   0x5   :  { %v78_v17 = vsel %vm72_vm0, %v76_v8, %v77_v9  ;;  %v81_v18 = vsel %vm72_vm0, %v79_v10, %v80_v11  ;;  %v153_v19 = vmax.f32 %v8_v0, %v75_v13  ;;  %v192_v20 = vrot.slane %v12_v4, 2  ;;  %v19_v61 = vld [vmem:[%s638_s0 + $0x58] sm:$0xff] }
   0x6   :  { %v155_v23 = vmax.f32 %v10_v2, %v78_v17  ;;  %v157_v24 = vmax.f32 %v12_v4, %v81_v18  ;;  %v188_v25 = vsel %vm185_vm1, %v186_v12, %v187_v14  ;;  %v191_v26 = vsel %vm185_vm1, %v189_v15, %v190_v16  ;;  %v21_v4 = vld [vmem:[%s638_s0 + $0x68] sm:$0xff] }
   0x7   :  { %v193_v27 = vrot.slane %v13_v5, 2  ;;  %v266_v28 = vmax.f32 %v153_v19, %v188_v25  ;;  %v154_v29 = vmax.f32 %v9_v1, %v74_v7  ;;  %v156_v30 = vmax.f32 %v11_v3, %v77_v9  ;;  %v20_v3 = vld [vmem:[%s638_s0 + $0x60] sm:$0xff] }
   0x8   :  { %v268_v31 = vmax.f32 %v155_v23, %v191_v26  ;;  %v158_v32 = vmax.f32 %v13_v5, %v80_v11  ;;  %v82_v33 = vrot.slane %v14_v21, 1  ;;  %v83_v34 = vrot.slane %v15_v22, 1 }
   0x9   :  { %v194_v35 = vsel %vm185_vm1, %v192_v20, %v193_v27  ;;  %v267_v36 = vmax.f32 %v154_v29, %v187_v14  ;;  %v269_v37 = vmax.f32 %v156_v30, %v190_v16  ;;  %v195_v38 = vrot.slane %v14_v21, 2 }
   0xa   :  { %v270_v40 = vmax.f32 %v157_v24, %v194_v35  ;;  %v298_v41 = vmax.f32 %v266_v28, %v268_v31  ;;  %v271_v42 = vmax.f32 %v158_v32, %v193_v27  ;;  %v84_v43 = vsel %vm72_vm0, %v82_v33, %v83_v34 }
   0xb   :  { %v299_v45 = vmax.f32 %v267_v36, %v269_v37  ;;  %v159_v46 = vmax.f32 %v14_v21, %v84_v43  ;;  %v196_v47 = vrot.slane %v15_v22, 2  ;;  %v160_v48 = vmax.f32 %v15_v22, %v83_v34  ;;  %v22_v21 = vld [vmem:[%s638_s0 + $0x70] sm:$0xff]  ;;  %v23_v22 = vld [vmem:[%s638_s0 + $0x78] sm:$0xff]  ;;  %v24_v43 = vld [vmem:[%s638_s0 + $0x80] sm:$0xff] }
   0xc   :  { %v326_v50 = vmax.f32 %v298_v41, %v270_v40  ;;  %v300_v51 = vmax.f32 %v268_v31, %v270_v40  ;;  %v301_v52 = vmax.f32 %v269_v37, %v271_v42  ;;  %v85_v53 = vrot.slane %v16_v39, 1 }
   0xd   :  { %v327_v54 = vmax.f32 %v299_v45, %v271_v42  ;;  %v197_v55 = vsel %vm185_vm1, %v195_v38, %v196_v47  ;;  %v273_v56 = vmax.f32 %v160_v48, %v196_v47  ;;  %v86_v57 = vrot.slane %v17_v44, 1 }
   0xe   :  { %355 = vst.msk [vmem:[%s639_s1] sm:$0xff] %vm354_vm2, %v326_v50  ;;  %v272_v58 = vmax.f32 %v159_v46, %v197_v55  ;;  %v198_v59 = vrot.slane %v16_v39, 2  ;;  %v199_v60 = vrot.slane %v17_v44, 2  ;;  %v88_v62 = vrot.slane %v18_v49, 1 }
   0xf   :  { %357 = vst.msk [vmem:[%s639_s1 + $0x8] sm:$0x3f] %vm356_vm3, %v327_v54  ;;  %v329_v63 = vmax.f32 %v301_v52, %v273_v56  ;;  %v87_v0 = vsel %vm72_vm0, %v85_v53, %v86_v57  ;;  %v162_v1 = vmax.f32 %v17_v44, %v86_v57  ;;  %v303_v2 = vmax.f32 %v271_v42, %v273_v56  ;;  %v25_v44 = vld [vmem:[%s638_s0 + $0x88] sm:$0xff]  ;;  %v27_v54 = vld [vmem:[%s638_s0 + $0x98] sm:$0xff] }
  0x10   :  { %v328_v5 = vmax.f32 %v300_v51, %v272_v58  ;;  %v161_v6 = vmax.f32 %v16_v39, %v87_v0  ;;  %v200_v7 = vsel %vm185_vm1, %v198_v59, %v199_v60  ;;  %v302_v8 = vmax.f32 %v270_v40, %v272_v58 }
  0x11   :  { %359 = vst.msk [vmem:[%s639_s1 + $0x18] sm:$0x3f] %vm356_vm3, %v329_v63  ;;  %v275_v9 = vmax.f32 %v162_v1, %v199_v60  ;;  %v89_v10 = vrot.slane %v19_v61, 1  ;;  %v201_v11 = vrot.slane %v18_v49, 2  ;;  %v202_v12 = vrot.slane %v19_v61, 2 }
  0x12   :  { %358 = vst.msk [vmem:[%s639_s1 + $0x10] sm:$0xff] %vm354_vm2, %v328_v5  ;;  %v274_v13 = vmax.f32 %v161_v6, %v200_v7  ;;  %v91_v14 = vrot.slane %v20_v3, 1  ;;  %v92_v15 = vrot.slane %v21_v4, 1  ;;  %v204_v16 = vrot.slane %v20_v3, 2  ;;  %v28_v7 = vld [vmem:[%s638_s0 + $0xa0] sm:$0xff] }
  0x13   :  { %v331_v17 = vmax.f32 %v303_v2, %v275_v9  ;;  %v90_v18 = vsel %vm72_vm0, %v88_v62, %v89_v10  ;;  %v203_v19 = vsel %vm185_vm1, %v201_v11, %v202_v12  ;;  %v164_v20 = vmax.f32 %v19_v61, %v89_v10 }
  0x14   :  { %v330_v23 = vmax.f32 %v302_v8, %v274_v13  ;;  %v163_v24 = vmax.f32 %v18_v49, %v90_v18  ;;  %v304_v25 = vmax.f32 %v272_v58, %v274_v13  ;;  %v305_v26 = vmax.f32 %v273_v56, %v275_v9  ;;  %v26_v49 = vld [vmem:[%s638_s0 + $0x90] sm:$0xff]  ;;  %v29_v8 = vld [vmem:[%s638_s0 + $0xa8] sm:$0xff] }
  0x15   :  { %361 = vst.msk [vmem:[%s639_s1 + $0x28] sm:$0x3f] %vm356_vm3, %v331_v17  ;;  %v277_v27 = vmax.f32 %v164_v20, %v202_v12  ;;  %v93_v28 = vsel %vm72_vm0, %v91_v14, %v92_v15  ;;  %v205_v29 = vrot.slane %v21_v4, 2  ;;  %v166_v30 = vmax.f32 %v21_v4, %v92_v15 }
  0x16   :  { %360 = vst.msk [vmem:[%s639_s1 + $0x20] sm:$0xff] %vm354_vm2, %v330_v23  ;;  %v276_v31 = vmax.f32 %v163_v24, %v203_v19  ;;  %v165_v32 = vmax.f32 %v20_v3, %v93_v28  ;;  %v94_v33 = vrot.slane %v22_v21, 1  ;;  %v95_v34 = vrot.slane %v23_v22, 1 }
  0x17   :  { %v333_v35 = vmax.f32 %v305_v26, %v277_v27  ;;  %v206_v36 = vsel %vm185_vm1, %v204_v16, %v205_v29  ;;  %v279_v37 = vmax.f32 %v166_v30, %v205_v29  ;;  %v307_v38 = vmax.f32 %v275_v9, %v277_v27  ;;  %v31_v30 = vld [vmem:[%s638_s0 + $0xb8] sm:$0xff] }
  0x18   :  { %v332_v39 = vmax.f32 %v304_v25, %v276_v31  ;;  %v278_v40 = vmax.f32 %v165_v32, %v206_v36  ;;  %v306_v41 = vmax.f32 %v274_v13, %v276_v31  ;;  %v96_v42 = vsel %vm72_vm0, %v94_v33, %v95_v34  ;;  %v30_v25 = vld [vmem:[%s638_s0 + $0xb0] sm:$0xff]  ;;  %v33_v36 = vld [vmem:[%s638_s0 + $0xc8] sm:$0xff] }
  0x19   :  { %363 = vst.msk [vmem:[%s639_s1 + $0x38] sm:$0x3f] %vm356_vm3, %v333_v35  ;;  %v335_v45 = vmax.f32 %v307_v38, %v279_v37  ;;  %v167_v46 = vmax.f32 %v22_v21, %v96_v42  ;;  %v207_v47 = vrot.slane %v22_v21, 2  ;;  %v208_v48 = vrot.slane %v23_v22, 2  ;;  %v32_v35 = vld [vmem:[%s638_s0 + $0xc0] sm:$0xff] }
  0x1a   :  { %362 = vst.msk [vmem:[%s639_s1 + $0x30] sm:$0xff] %vm354_vm2, %v332_v39  ;;  %v334_v50 = vmax.f32 %v306_v41, %v278_v40  ;;  %v308_v51 = vmax.f32 %v276_v31, %v278_v40  ;;  %v168_v52 = vmax.f32 %v23_v22, %v95_v34  ;;  %v309_v53 = vmax.f32 %v277_v27, %v279_v37 }
  0x1b   :  { %365 = vst.msk [vmem:[%s639_s1 + $0x48] sm:$0x3f] %vm356_vm3, %v335_v45  ;;  %v209_v55 = vsel %vm185_vm1, %v207_v47, %v208_v48  ;;  %v97_v56 = vrot.slane %v24_v43, 1  ;;  %v98_v57 = vrot.slane %v25_v44, 1  ;;  %v210_v58 = vrot.slane %v24_v43, 2 }
  0x1c   :  { %364 = vst.msk [vmem:[%s639_s1 + $0x40] sm:$0xff] %vm354_vm2, %v334_v50  ;;  %v280_v59 = vmax.f32 %v167_v46, %v209_v55  ;;  %v281_v60 = vmax.f32 %v168_v52, %v208_v48  ;;  %v211_v61 = vrot.slane %v25_v44, 2  ;;  %v100_v62 = vrot.slane %v26_v49, 1 }
  0x1d   :  { %v99_v63 = vsel %vm72_vm0, %v97_v56, %v98_v57  ;;  %v170_v0 = vmax.f32 %v25_v44, %v98_v57  ;;  %v101_v1 = vrot.slane %v27_v54, 1  ;;  %v213_v2 = vrot.slane %v26_v49, 2 }
  0x1e   :  { %v336_v3 = vmax.f32 %v308_v51, %v280_v59  ;;  %v337_v4 = vmax.f32 %v309_v53, %v281_v60  ;;  %v169_v5 = vmax.f32 %v24_v43, %v99_v63  ;;  %v212_v6 = vsel %vm185_vm1, %v210_v58, %v211_v61 }
  0x1f   :  { %v310_v9 = vmax.f32 %v278_v40, %v280_v59  ;;  %v283_v10 = vmax.f32 %v170_v0, %v211_v61  ;;  %v311_v11 = vmax.f32 %v279_v37, %v281_v60  ;;  %v102_v12 = vsel %vm72_vm0, %v100_v62, %v101_v1 }
  0x20   :  { %366 = vst.msk [vmem:[%s639_s1 + $0x50] sm:$0xff] %vm354_vm2, %v336_v3  ;;  %v282_v13 = vmax.f32 %v169_v5, %v212_v6  ;;  %v171_v14 = vmax.f32 %v26_v49, %v102_v12  ;;  %v214_v15 = vrot.slane %v27_v54, 2  ;;  %v172_v16 = vmax.f32 %v27_v54, %v101_v1  ;;  %v34_v49 = vld [vmem:[%s638_s0 + $0xd0] sm:$0xff]  ;;  %v35_v54 = vld [vmem:[%s638_s0 + $0xd8] sm:$0xff]  ;;  %v37_v12 = vld [vmem:[%s638_s0 + $0xe8] sm:$0xff] }
  0x21   :  { %367 = vst.msk [vmem:[%s639_s1 + $0x58] sm:$0x3f] %vm356_vm3, %v337_v4  ;;  %v339_v17 = vmax.f32 %v311_v11, %v283_v10  ;;  %v313_v18 = vmax.f32 %v281_v60, %v283_v10  ;;  %v103_v19 = vrot.slane %v28_v7, 1  ;;  %v104_v20 = vrot.slane %v29_v8, 1  ;;  %v36_v11 = vld [vmem:[%s638_s0 + $0xe0] sm:$0xff] }
  0x22   :  { %v338_v21 = vmax.f32 %v310_v9, %v282_v13  ;;  %v215_v22 = vsel %vm185_vm1, %v213_v2, %v214_v15  ;;  %v312_v23 = vmax.f32 %v280_v59, %v282_v13  ;;  %v285_v24 = vmax.f32 %v172_v16, %v214_v15 }
  0x23   :  { %369 = vst.msk [vmem:[%s639_s1 + $0x68] sm:$0x3f] %vm356_vm3, %v339_v17  ;;  %v284_v26 = vmax.f32 %v171_v14, %v215_v22  ;;  %v105_v27 = vsel %vm72_vm0, %v103_v19, %v104_v20  ;;  %v216_v28 = vrot.slane %v28_v7, 2  ;;  %v217_v29 = vrot.slane %v29_v8, 2  ;;  %v38_v17 = vld [vmem:[%s638_s0 + $0xf0] sm:$0xff] }
  0x24   :  { %368 = vst.msk [vmem:[%s639_s1 + $0x60] sm:$0xff] %vm354_vm2, %v338_v21  ;;  %v341_v31 = vmax.f32 %v313_v18, %v285_v24  ;;  %v173_v32 = vmax.f32 %v28_v7, %v105_v27  ;;  %v174_v33 = vmax.f32 %v29_v8, %v104_v20  ;;  %v315_v34 = vmax.f32 %v283_v10, %v285_v24 }
  0x25   :  { %v340_v37 = vmax.f32 %v312_v23, %v284_v26  ;;  %v218_v38 = vsel %vm185_vm1, %v216_v28, %v217_v29  ;;  %v314_v39 = vmax.f32 %v282_v13, %v284_v26  ;;  %v106_v40 = vrot.slane %v30_v25, 1 }
  0x26   :  { %371 = vst.msk [vmem:[%s639_s1 + $0x78] sm:$0x3f] %vm356_vm3, %v341_v31  ;;  %v286_v41 = vmax.f32 %v173_v32, %v218_v38  ;;  %v287_v42 = vmax.f32 %v174_v33, %v217_v29  ;;  %v107_v43 = vrot.slane %v31_v30, 1  ;;  %v219_v44 = vrot.slane %v30_v25, 2  ;;  %v39_v29 = vld [vmem:[%s638_s0 + $0xf8] sm:$0xff] }
  0x27   :  { %370 = vst.msk [vmem:[%s639_s1 + $0x70] sm:$0xff] %vm354_vm2, %v340_v37  ;;  %v220_v45 = vrot.slane %v31_v30, 2  ;;  %v109_v46 = vrot.slane %v32_v35, 1  ;;  %v110_v47 = vrot.slane %v33_v36, 1  ;;  %v222_v48 = vrot.slane %v32_v35, 2 }
  0x28   :  { %v342_v50 = vmax.f32 %v314_v39, %v286_v41  ;;  %v343_v51 = vmax.f32 %v315_v34, %v287_v42  ;;  %v108_v52 = vsel %vm72_vm0, %v106_v40, %v107_v43  ;;  %v316_v53 = vmax.f32 %v284_v26, %v286_v41 }
  0x29   :  { %v175_v55 = vmax.f32 %v30_v25, %v108_v52  ;;  %v221_v56 = vsel %vm185_vm1, %v219_v44, %v220_v45  ;;  %v176_v57 = vmax.f32 %v31_v30, %v107_v43  ;;  %v317_v58 = vmax.f32 %v285_v24, %v287_v42 }
  0x2a   :  { %372 = vst.msk [vmem:[%s639_s1 + $0x80] sm:$0xff] %vm354_vm2, %v342_v50  ;;  %v111_v59 = vsel %vm72_vm0, %v109_v46, %v110_v47  ;;  %v223_v60 = vrot.slane %v33_v36, 2  ;;  %v178_v61 = vmax.f32 %v33_v36, %v110_v47  ;;  %v112_v62 = vrot.slane %v34_v49, 1 }
  0x2b   :  { %373 = vst.msk [vmem:[%s639_s1 + $0x88] sm:$0x3f] %vm356_vm3, %v343_v51  ;;  %v288_v63 = vmax.f32 %v175_v55, %v221_v56  ;;  %v289_v0 = vmax.f32 %v176_v57, %v220_v45  ;;  %v177_v1 = vmax.f32 %v32_v35, %v111_v59  ;;  %v113_v2 = vrot.slane %v35_v54, 1 }
  0x2c   :  { %v224_v3 = vsel %vm185_vm1, %v222_v48, %v223_v60  ;;  %v291_v4 = vmax.f32 %v178_v61, %v223_v60  ;;  %v225_v5 = vrot.slane %v34_v49, 2  ;;  %v226_v6 = vrot.slane %v35_v54, 2 }
  0x2d   :  { %v344_v7 = vmax.f32 %v316_v53, %v288_v63  ;;  %v345_v8 = vmax.f32 %v317_v58, %v289_v0  ;;  %v290_v9 = vmax.f32 %v177_v1, %v224_v3  ;;  %v318_v10 = vmax.f32 %v286_v41, %v288_v63 }
  0x2e   :  { %v319_v13 = vmax.f32 %v287_v42, %v289_v0  ;;  %v114_v14 = vsel %vm72_vm0, %v112_v62, %v113_v2  ;;  %v227_v15 = vsel %vm185_vm1, %v225_v5, %v226_v6  ;;  %v180_v16 = vmax.f32 %v35_v54, %v113_v2 }
  0x2f   :  { %374 = vst.msk [vmem:[%s639_s1 + $0x90] sm:$0xff] %vm354_vm2, %v344_v7  ;;  %v346_v18 = vmax.f32 %v318_v10, %v290_v9  ;;  %v179_v19 = vmax.f32 %v34_v49, %v114_v14  ;;  %v320_v20 = vmax.f32 %v288_v63, %v290_v9  ;;  %v321_v21 = vmax.f32 %v289_v0, %v291_v4 }
  0x30   :  { %375 = vst.msk [vmem:[%s639_s1 + $0x98] sm:$0x3f] %vm356_vm3, %v345_v8  ;;  %v347_v22 = vmax.f32 %v319_v13, %v291_v4  ;;  %v293_v23 = vmax.f32 %v180_v16, %v226_v6  ;;  %v115_v24 = vrot.slane %v36_v11, 1  ;;  %v116_v25 = vrot.slane %v37_v12, 1 }
  0x31   :  { %376 = vst.msk [vmem:[%s639_s1 + $0xa0] sm:$0xff] %vm354_vm2, %v346_v18  ;;  %v292_v26 = vmax.f32 %v179_v19, %v227_v15  ;;  %v228_v27 = vrot.slane %v36_v11, 2  ;;  %v229_v28 = vrot.slane %v37_v12, 2  ;;  %v118_v30 = vrot.slane %v38_v17, 1 }
  0x32   :  { %377 = vst.msk [vmem:[%s639_s1 + $0xa8] sm:$0x3f] %vm356_vm3, %v347_v22  ;;  %v349_v31 = vmax.f32 %v321_v21, %v293_v23  ;;  %v117_v32 = vsel %vm72_vm0, %v115_v24, %v116_v25  ;;  %v182_v33 = vmax.f32 %v37_v12, %v116_v25  ;;  %v323_v34 = vmax.f32 %v291_v4, %v293_v23 }
  0x33   :  { %v348_v35 = vmax.f32 %v320_v20, %v292_v26  ;;  %v181_v36 = vmax.f32 %v36_v11, %v117_v32  ;;  %v230_v37 = vsel %vm185_vm1, %v228_v27, %v229_v28  ;;  %v322_v38 = vmax.f32 %v290_v9, %v292_v26 }
  0x34   :  { %379 = vst.msk [vmem:[%s639_s1 + $0xb8] sm:$0x3f] %vm356_vm3, %v349_v31  ;;  %v295_v39 = vmax.f32 %v182_v33, %v229_v28  ;;  %v119_v40 = vrot.slane %v39_v29, 1  ;;  %v231_v41 = vrot.slane %v38_v17, 2  ;;  %v232_v42 = vrot.slane %v39_v29, 2 }
  0x35   :  { %378 = vst.msk [vmem:[%s639_s1 + $0xb0] sm:$0xff] %vm354_vm2, %v348_v35  ;;  %v294_v43 = vmax.f32 %v181_v36, %v230_v37 }
  0x36   :  { %v351_v44 = vmax.f32 %v323_v34, %v295_v39  ;;  %v120_v45 = vsel %vm72_vm0, %v118_v30, %v119_v40  ;;  %v233_v46 = vsel %vm185_vm1, %v231_v41, %v232_v42  ;;  %v184_v47 = vmax.f32 %v39_v29, %v119_v40 }
  0x37   :  { %v350_v48 = vmax.f32 %v322_v38, %v294_v43  ;;  %v183_v49 = vmax.f32 %v38_v17, %v120_v45  ;;  %v324_v50 = vmax.f32 %v292_v26, %v294_v43  ;;  %v325_v51 = vmax.f32 %v293_v23, %v295_v39 }
  0x38   :  { %381 = vst.msk [vmem:[%s639_s1 + $0xc8] sm:$0x3f] %vm356_vm3, %v351_v44  ;;  %v297_v52 = vmax.f32 %v184_v47, %v232_v42 }
  0x39   :  { %380 = vst.msk [vmem:[%s639_s1 + $0xc0] sm:$0xff] %vm354_vm2, %v350_v48  ;;  %v296_v53 = vmax.f32 %v183_v49, %v233_v46 }
  0x3a   :  { %v353_v54 = vmax.f32 %v325_v51, %v297_v52 }
  0x3b   :  { %v352_v55 = vmax.f32 %v324_v50, %v296_v53 }
  0x3c   :  { %383 = vst.msk [vmem:[%s639_s1 + $0xd8] sm:$0x3f] %vm356_vm3, %v353_v54 }
  0x3d   :  { %382 = vst.msk [vmem:[%s639_s1 + $0xd0] sm:$0xff] %vm354_vm2, %v352_v55 }

</bundles_post_ra>
